<compile_context>
chip_gen: v5e
topology: v5e:2x2
jax: 0.10.0
libtpu: 0.0.40
codegen_flags: <defaults>
</compile_context>

<pallas_src>
import jax
import jax.numpy as jnp
from jax.experimental import pallas as pl
from jax.experimental.pallas import tpu as pltpu


def _transition_kernel(scale_ref, shift_ref, w_ref, x_ref, o_ref):
    # x_ref block: (1, 2*Hb, W, C_in)  -- one image, Hb consecutive row-pairs
    # o_ref block: (1, Hb, W//2, C_out)
    _, two_hb, W, C_in = x_ref.shape
    Hb = two_hb // 2
    Wo = W // 2
    C_out = o_ref.shape[-1]

    x = x_ref[...].reshape(two_hb, W, C_in)

    # BatchNorm (eval, folded; includes the 0.25 pool factor) + ReLU.  VPU.
    a = jnp.maximum(x * scale_ref[...] + shift_ref[...], 0.0)

    # 2x2 average pool BEFORE the 1x1 conv (both linear -> they commute).
    # Row-pair add then width-pair add; the 1/4 factor is already folded into
    # scale/shift above, so plain sums suffice.
    a = a.reshape(Hb, 2, W, C_in)
    a = a[:, 0] + a[:, 1]                      # (Hb, W, C_in)
    a = a.reshape(Hb, Wo, 2, C_in)
    a = a[:, :, 0, :] + a[:, :, 1, :]          # (Hb, Wo, C_in)

    # 1x1 conv == channel matmul on the MXU.  Compute dtype follows the
    # weight ref (bf16 by default), f32 accumulation.
    pooled = a.reshape(Hb * Wo, C_in).astype(w_ref.dtype)
    y = jnp.dot(pooled, w_ref[...], preferred_element_type=jnp.float32)

    o_ref[...] = y.reshape(1, Hb, Wo, C_out).astype(o_ref.dtype)


def _vmem_capacity_bytes():
    try:
        return int(pltpu.get_tpu_info().vmem_capacity_bytes)
    except Exception:
        return 64 * 1024 * 1024        # conservative: v7x per-TensorCore VMEM


def _pick_hb(N, H, W, C_in, C_out, x_itemsize, block_budget_bytes):
    """Largest Hb (row-pairs per grid step) whose double-buffered blocks fit."""
    half = H // 2
    Wo = W // 2

    def fits(hb):
        in_b = 2 * hb * W * C_in * x_itemsize   # input block
        out_b = hb * Wo * C_out * 4             # f32 output block
        return 2 * (in_b + out_b) <= block_budget_bytes   # double-buffered

    candidates = [hb for hb in range(1, half + 1) if half % hb == 0 and fits(hb)]
    if not candidates:
        return 1
    if N % 2 == 1:
        # v7x has 2 TensorCores: if N alone can't split evenly across them,
        # prefer an Hb that leaves an even parallel grid extent along H.
        even = [hb for hb in candidates if (half // hb) % 2 == 0]
        if even:
            return max(even)
    return max(candidates)


def transition_forward(x_nchw, gamma, beta, running_mean, running_var, conv_w,
                       eps=1e-5, compute_dtype=jnp.bfloat16):
    """DenseNet _Transition forward (eval mode).

    x_nchw: (N, C_in, H, W).  conv_w: (C_out, C_in, 1, 1)  (PyTorch layouts).
    Returns (N, C_out, H//2, W//2) float32.
    """
    N, C_in, H, W = x_nchw.shape
    C_out = conv_w.shape[0]
    assert H % 2 == 0 and W % 2 == 0, "AvgPool2d(2,2) path requires even H, W"
    Wo = W // 2

    # Fold BatchNorm (eval) AND the 0.25 avg-pool factor into scale/shift.
    inv_std = 1.0 / jnp.sqrt(running_var.astype(jnp.float32) + eps)
    g32 = gamma.astype(jnp.float32)
    scale = (0.25 * g32 * inv_std).reshape(1, C_in)
    shift = (0.25 * (beta.astype(jnp.float32)
                     - running_mean.astype(jnp.float32) * g32 * inv_std)
             ).reshape(1, C_in)

    # 1x1 conv weight -> (C_in, C_out) matmul weight in the MXU compute dtype.
    w = jnp.transpose(conv_w.reshape(C_out, C_in), (1, 0)).astype(compute_dtype)

    # NCHW -> NHWC (channels on the lane axis).  No dtype upcast here.
    x = jnp.transpose(x_nchw, (0, 2, 3, 1))

    # Generation-aware block sizing (v5e/v6e: 128 MiB VMEM, v7x: 64 MiB).
    vmem_cap = _vmem_capacity_bytes()
    block_budget = (vmem_cap * 3) // 8      # for double-buffered in+out blocks
    vmem_limit = (vmem_cap * 3) // 4        # leaves headroom for weights, etc.
    hb = _pick_hb(N, H, W, C_in, C_out, x.dtype.itemsize, block_budget)

    grid = (N, (H // 2) // hb)

    out_nhwc = pl.pallas_call(
        _transition_kernel,
        out_shape=jax.ShapeDtypeStruct((N, H // 2, Wo, C_out), jnp.float32),
        grid_spec=pltpu.PrefetchScalarGridSpec(
            num_scalar_prefetch=0,
            grid=grid,
            in_specs=[
                pl.BlockSpec((1, C_in), lambda n, h: (0, 0)),              # scale
                pl.BlockSpec((1, C_in), lambda n, h: (0, 0)),              # shift
                pl.BlockSpec((C_in, C_out), lambda n, h: (0, 0)),          # conv weight
                pl.BlockSpec((1, 2 * hb, W, C_in), lambda n, h: (n, h, 0, 0)),  # x rows
            ],
            out_specs=pl.BlockSpec((1, hb, Wo, C_out), lambda n, h: (n, h, 0, 0)),
        ),
        compiler_params=pltpu.CompilerParams(
            dimension_semantics=("parallel", "parallel"),
            vmem_limit_bytes=int(vmem_limit)),
    )(scale, shift, w, x)

    # NHWC -> NCHW to match the PyTorch module's output convention.
    return jnp.transpose(out_nhwc, (0, 3, 1, 2))


def _reference(x_nchw, gamma, beta, running_mean, running_var, conv_w, eps=1e-5):
    # Pure-JAX f32 reference with identical eval-mode semantics (conv then pool).
    x = x_nchw.astype(jnp.float32)
    scale = gamma / jnp.sqrt(running_var + eps)
    shift = beta - running_mean * scale
    xb = x * scale[None, :, None, None] + shift[None, :, None, None]
    xr = jnp.maximum(xb, 0.0)
    y = jnp.einsum("nchw,oc->nohw", xr,
                   conv_w.reshape(conv_w.shape[0], conv_w.shape[1]))
    N, Co, H, W = y.shape
    return y.reshape(N, Co, H // 2, 2, W // 2, 2).mean(axis=(3, 5))


if __name__ == "__main__":
    key = jax.random.PRNGKey(0)
    N, C_in, H, W = 2, 8, 16, 16
    C_out = 4

    k1, k2, k3, k4, k5, k6 = jax.random.split(key, 6)
    x = jax.random.normal(k1, (N, C_in, H, W), dtype=jnp.float32)

    # Deterministic synthetic parameters (shapes per nn.BatchNorm2d / nn.Conv2d).
    gamma = 1.0 + 0.1 * jax.random.normal(k2, (C_in,), dtype=jnp.float32)
    beta = 0.1 * jax.random.normal(k3, (C_in,), dtype=jnp.float32)
    running_mean = 0.1 * jax.random.normal(k4, (C_in,), dtype=jnp.float32)
    running_var = jax.random.uniform(k5, (C_in,), minval=0.5, maxval=1.5,
                                     dtype=jnp.float32)
    conv_w = jax.random.normal(k6, (C_out, C_in, 1, 1), dtype=jnp.float32) \
        * (1.0 / jnp.sqrt(C_in))

    ref = _reference(x, gamma, beta, running_mean, running_var, conv_w)

    # Strict-accuracy f32 MXU path.
    out_f32 = transition_forward(x, gamma, beta, running_mean, running_var,
                                 conv_w, compute_dtype=jnp.float32)
    out_f32 = jax.block_until_ready(out_f32)
    assert out_f32.shape == (N, C_out, H // 2, W // 2), out_f32.shape
    assert jnp.allclose(out_f32, ref, atol=1e-4, rtol=1e-4), \
        float(jnp.max(jnp.abs(out_f32 - ref)))

    # Default fast path: bf16 MXU matmul with f32 accumulation.
    out_bf16 = transition_forward(x, gamma, beta, running_mean, running_var,
                                  conv_w)
    out_bf16 = jax.block_until_ready(out_bf16)
    assert out_bf16.shape == (N, C_out, H // 2, W // 2), out_bf16.shape
    assert jnp.allclose(out_bf16, ref, atol=2e-2, rtol=2e-2), \
        float(jnp.max(jnp.abs(out_bf16 - ref)))

    print("KERNEL_OK")
</pallas_src>

<mosaic_0001>
module attributes {stable_mosaic.version = 11 : i64} {
  func.func @_transition_kernel(%arg0: i32, %arg1: i32, %arg2: memref<1x8xf32, #tpu.memory_space<vmem>>, %arg3: memref<1x8xf32, #tpu.memory_space<vmem>>, %arg4: memref<8x4xf32, #tpu.memory_space<vmem>>, %arg5: memref<1x16x16x8xf32, #tpu.memory_space<vmem>>, %arg6: memref<1x8x8x4xf32, #tpu.memory_space<vmem>>) attributes {dimension_semantics = [#tpu.dimension_semantics<parallel>, #tpu.dimension_semantics<parallel>], iteration_bounds = array<i64: 2, 1>, scalar_prefetch = 0 : i64, scratch_operands = 0 : i64, tpu.core_type = #tpu.core_type<tc>, window_params = [{pipeline_mode = #tpu.pipeline_mode<synchronous>, transform_indices = @transform_0, window_bounds = array<i64: 1, 8>}, {pipeline_mode = #tpu.pipeline_mode<synchronous>, transform_indices = @transform_1, window_bounds = array<i64: 1, 8>}, {pipeline_mode = #tpu.pipeline_mode<synchronous>, transform_indices = @transform_2, window_bounds = array<i64: 8, 4>}, {transform_indices = @transform_3, window_bounds = array<i64: 1, 16, 16, 8>}, {transform_indices = @transform_4, window_bounds = array<i64: 1, 8, 8, 4>}]} {
    %c0 = arith.constant 0 : index
    %c0_0 = arith.constant 0 : index
    %c0_1 = arith.constant 0 : index
    %c0_2 = arith.constant 0 : index
    %0 = vector.load %arg5[%c0, %c0_0, %c0_1, %c0_2] : memref<1x16x16x8xf32, #tpu.memory_space<vmem>>, vector<1x16x16x8xf32>
    %1 = vector.shape_cast %0 : vector<1x16x16x8xf32> to vector<16x16x8xf32>
    %c0_3 = arith.constant 0 : index
    %c0_4 = arith.constant 0 : index
    %2 = vector.load %arg2[%c0_3, %c0_4] : memref<1x8xf32, #tpu.memory_space<vmem>>, vector<1x8xf32>
    %3 = vector.shape_cast %2 : vector<1x8xf32> to vector<1x1x8xf32>
    %4 = vector.broadcast %3 : vector<1x1x8xf32> to vector<16x16x8xf32>
    %5 = arith.mulf %1, %4 : vector<16x16x8xf32>
    %c0_5 = arith.constant 0 : index
    %c0_6 = arith.constant 0 : index
    %6 = vector.load %arg3[%c0_5, %c0_6] : memref<1x8xf32, #tpu.memory_space<vmem>>, vector<1x8xf32>
    %7 = vector.shape_cast %6 : vector<1x8xf32> to vector<1x1x8xf32>
    %8 = vector.broadcast %7 : vector<1x1x8xf32> to vector<16x16x8xf32>
    %9 = arith.addf %5, %8 : vector<16x16x8xf32>
    %cst = arith.constant 0.000000e+00 : f32
    %10 = vector.broadcast %cst : f32 to vector<16x16x8xf32>
    %11 = arith.maximumf %9, %10 : vector<16x16x8xf32>
    %12 = vector.shape_cast %11 : vector<16x16x8xf32> to vector<8x2x16x8xf32>
    %13 = vector.extract_strided_slice %12 {offsets = [0, 0, 0, 0], sizes = [8, 1, 16, 8], strides = [1, 1, 1, 1]} : vector<8x2x16x8xf32> to vector<8x1x16x8xf32>
    %14 = vector.shape_cast %13 : vector<8x1x16x8xf32> to vector<8x16x8xf32>
    %15 = vector.extract_strided_slice %12 {offsets = [0, 1, 0, 0], sizes = [8, 1, 16, 8], strides = [1, 1, 1, 1]} : vector<8x2x16x8xf32> to vector<8x1x16x8xf32>
    %16 = vector.shape_cast %15 : vector<8x1x16x8xf32> to vector<8x16x8xf32>
    %17 = arith.addf %14, %16 : vector<8x16x8xf32>
    %18 = vector.shape_cast %17 : vector<8x16x8xf32> to vector<8x8x2x8xf32>
    %19 = vector.extract_strided_slice %18 {offsets = [0, 0, 0, 0], sizes = [8, 8, 1, 8], strides = [1, 1, 1, 1]} : vector<8x8x2x8xf32> to vector<8x8x1x8xf32>
    %20 = vector.shape_cast %19 : vector<8x8x1x8xf32> to vector<8x8x8xf32>
    %21 = vector.extract_strided_slice %18 {offsets = [0, 0, 1, 0], sizes = [8, 8, 1, 8], strides = [1, 1, 1, 1]} : vector<8x8x2x8xf32> to vector<8x8x1x8xf32>
    %22 = vector.shape_cast %21 : vector<8x8x1x8xf32> to vector<8x8x8xf32>
    %23 = arith.addf %20, %22 : vector<8x8x8xf32>
    %24 = vector.shape_cast %23 : vector<8x8x8xf32> to vector<64x8xf32>
    %c0_7 = arith.constant 0 : index
    %c0_8 = arith.constant 0 : index
    %25 = vector.load %arg4[%c0_7, %c0_8] : memref<8x4xf32, #tpu.memory_space<vmem>>, vector<8x4xf32>
    %cst_9 = arith.constant dense<0.000000e+00> : vector<64x4xf32>
    %26 = tpu.matmul %24, %25, %cst_9 {dimension_numbers = #tpu.dot_dimension_numbers<[1], [0], [0], [1], [0, 0, 1, 1], [], []>} : vector<64x8xf32>, vector<8x4xf32>, vector<64x4xf32> -> vector<64x4xf32>
    %27 = vector.shape_cast %26 : vector<64x4xf32> to vector<1x8x8x4xf32>
    %c0_10 = arith.constant 0 : index
    %c0_11 = arith.constant 0 : index
    %c0_12 = arith.constant 0 : index
    %c0_13 = arith.constant 0 : index
    %28 = vector.load %arg6[%c0_10, %c0_11, %c0_12, %c0_13] : memref<1x8x8x4xf32, #tpu.memory_space<vmem>>, vector<1x8x8x4xf32>
    tpu.vector_store %arg6[%c0_10, %c0_11, %c0_12, %c0_13], %27 {strides = array<i32>} : memref<1x8x8x4xf32, #tpu.memory_space<vmem>>, vector<1x8x8x4xf32>,
    return
  }
  func.func @transform_0(%arg0: i32, %arg1: i32) -> (i32, i32) {
    %c0_i32 = arith.constant 0 : i32
    %c0_i32_0 = arith.constant 0 : i32
    %c0_i32_1 = arith.constant 0 : i32
    return %c0_i32, %c0_i32_0 : i32, i32
  }
  func.func @transform_1(%arg0: i32, %arg1: i32) -> (i32, i32) {
    %c0_i32 = arith.constant 0 : i32
    %c0_i32_0 = arith.constant 0 : i32
    %c0_i32_1 = arith.constant 0 : i32
    return %c0_i32, %c0_i32_0 : i32, i32
  }
  func.func @transform_2(%arg0: i32, %arg1: i32) -> (i32, i32) {
    %c0_i32 = arith.constant 0 : i32
    %c0_i32_0 = arith.constant 0 : i32
    %c0_i32_1 = arith.constant 0 : i32
    return %c0_i32, %c0_i32_0 : i32, i32
  }
  func.func @transform_3(%arg0: i32, %arg1: i32) -> (i32, i32, i32, i32) {
    %c0_i32 = arith.constant 0 : i32
    %c0_i32_0 = arith.constant 0 : i32
    %c0_i32_1 = arith.constant 0 : i32
    return %arg0, %arg1, %c0_i32, %c0_i32_0 : i32, i32, i32, i32
  }
  func.func @transform_4(%arg0: i32, %arg1: i32) -> (i32, i32, i32, i32) {
    %c0_i32 = arith.constant 0 : i32
    %c0_i32_0 = arith.constant 0 : i32
    %c0_i32_1 = arith.constant 0 : i32
    return %arg0, %arg1, %c0_i32, %c0_i32_0 : i32, i32, i32, i32
  }
}

</mosaic_0001>

<bundles_post_ra>
// kernel: tpu_custom_call.1
= control target key start
LH: loop header
LB: loop body
LE: loop exit
PB: predicated region body
PF: predicated region fallthrough
CT: control target
= control target key end

     0   :  { %s1272_s15 = smov 0   ;;  %s1274_s16 = smov 0   ;;  %s1504_s0 = inlined_call_operand.vmem [shape: f32[1,8], index: 0, kind: input, shape index: {}]   ;;  %s1505_s1 = inlined_call_operand.vmem [shape: f32[1,8], index: 1, kind: input, shape index: {}]   ;;  %s1506_s2 = inlined_call_operand.vmem [shape: f32[8,4], index: 2, kind: input, shape index: {}]   ;;  %s1507_s3 = inlined_call_operand.vmem [shape: f32[2,16,16,8], index: 3, kind: input, shape index: {}]   ;;  %s1508_s4 = inlined_call_operand.vmem [shape: f32[2,8,8,4], index: 4, kind: output, shape index: {}]  }
   0x1   :  { %s1276_s17 = smov 0  }
   0x2 LB: > { %s26_s18 = sadd.s32 1, %s1241_s16  ;;  %p1113_p0 = scmp.ge.s32.totalorder %s1245_s17, 1  ;;  %s1245_s17 = sphi %s1276_s17, %s14_s17   ;;  %s1241_s16 = sphi %s1274_s16, %s1510_s16   ;;  %s1237_s15 = sphi %s1272_s15, %s1509_s15  }
   0x3   : > { %p28_p1 = scmp.ge.s32.totalorder %s26_s18, 2  ;;  %p184_p2 = scmp.lt.s32.totalorder %s1245_s17, 3 }
   0x5   : > { %s1512_s18 = smov (%p28_p1, %s26_s18), 0  ;;  %p185_p3 = pnand %p1113_p0, %p184_p2 }
   0x6   : > { %p220_p4 = scmp.lt.s32.totalorder (!%p185_p3), %s1237_s15, 1 }
   0x7   : > { %188 = sbr.rel (%p185_p3) target bundleno = 253 (0xfd), region = 36 }
   0xc   : > { %v760_v0 = vld [vmem:[%s1506_s2] sm:$0xff]  ;;  %s1514_s15 = smov (!%p220_p4, %s1237_s15), 1  ;;  %vm889_vm0 = vcmask 1041409   ;;  %vm891_vm1 = vcmask 1042434   ;;  %vm893_vm2 = vcmask 1043459   ;;  %vm895_vm3 = vcmask 1044484  }
   0xd   : > { %1195 = vmatpush.msra.mxu2 %v760_v0  ;;  %1196 = vmatpush.msra.mxu3 %v760_v0  ;;  %v1298_v1 = vld [vmem:[%s1504_s0] ss:$0 sm:$0xff]  ;;  %s1192_s23 = sshll.u32 %s1514_s15, 8  ;;  %vm897_vm4 = vcmask 1045509   ;;  %vm899_vm5 = vcmask 1046534   ;;  %vm901_vm6 = vcmask 1047559  }
   0xe   : > { %984 = vmatpush.msra.mxu0 %v760_v0  ;;  %1194 = vmatpush.msra.mxu1 %v760_v0  ;;  %s1304_s26 = scalar_lea.vmem %s1507_s3, %s1192_s23  ;;  %v1309_v2 = vld [vmem:[%s1505_s1] ss:$0 sm:$0xff]  ;;  %vm952_vm7 = vcmask 64512   ;;  %s1193_s29 = sshll.u32 %s1514_s15, 6  ;;  %vm1010_vm8 = vcmask 31744  }
   0xf   : > { %v256_v3 = vld [vmem:[%s1304_s26 + $0x80] sm:$0xff]  ;;  %v257_v4 = vld [vmem:[%s1304_s26 + $0x88] sm:$0xff]  ;;  %v258_v5 = vld [vmem:[%s1304_s26 + $0x90] sm:$0xff]  ;;  %s238_s6 = scalar_lea.vmem %s1508_s4, %s1193_s29 }
  0x10   : > { %v259_v6 = vld [vmem:[%s1304_s26 + $0x98] sm:$0xff]  ;;  %v292_v7 = vmul.f32 %v1298_v1, %v256_v3  ;;  %v293_v8 = vmul.f32 %v1298_v1, %v257_v4  ;;  %v294_v9 = vmul.f32 %v1298_v1, %v258_v5  ;;  %v264_v10 = vld [vmem:[%s1304_s26 + $0xc0] sm:$0xff]  ;;  %v265_v11 = vld [vmem:[%s1304_s26 + $0xc8] sm:$0xff] }
  0x11   : > { %v295_v12 = vmul.f32 %v1298_v1, %v259_v6  ;;  %v266_v13 = vld [vmem:[%s1304_s26 + $0xd0] sm:$0xff]  ;;  %v267_v14 = vld [vmem:[%s1304_s26 + $0xd8] sm:$0xff]  ;;  %v300_v15 = vmul.f32 %v1298_v1, %v264_v10  ;;  %v301_v16 = vmul.f32 %v1298_v1, %v265_v11  ;;  %v240_v25 = vld [vmem:[%s1304_s26] sm:$0xff] }
  0x12   : > { %v328_v17 = vadd.f32 %v1309_v2, %v292_v7  ;;  %v329_v18 = vadd.f32 %v1309_v2, %v293_v8  ;;  %v330_v19 = vadd.f32 %v1309_v2, %v294_v9  ;;  %v302_v20 = vmul.f32 %v1298_v1, %v266_v13  ;;  %v241_v26 = vld [vmem:[%s1304_s26 + $0x8] sm:$0xff]  ;;  %v242_v31 = vld [vmem:[%s1304_s26 + $0x10] sm:$0xff]  ;;  %v243_v32 = vld [vmem:[%s1304_s26 + $0x18] sm:$0xff] }
  0x13   : > { %v331_v21 = vadd.f32 %v1309_v2, %v295_v12  ;;  %v303_v22 = vmul.f32 %v1298_v1, %v267_v14  ;;  %v336_v23 = vadd.f32 %v1309_v2, %v300_v15  ;;  %v337_v24 = vadd.f32 %v1309_v2, %v301_v16 }
  0x14   : > { %v360_v27 = vmax.f32 %v328_v17, 0.0  ;;  %v361_v28 = vmax.f32 %v329_v18, 0.0  ;;  %v362_v29 = vmax.f32 %v330_v19, 0.0  ;;  %v338_v30 = vadd.f32 %v1309_v2, %v302_v20 }
  0x15   : > { %v363_v33 = vmax.f32 %v331_v21, 0.0  ;;  %v339_v34 = vadd.f32 %v1309_v2, %v303_v22  ;;  %v368_v35 = vmax.f32 %v336_v23, 0.0  ;;  %v369_v36 = vmax.f32 %v337_v24, 0.0 }
  0x16   : > { %v384_v37 = vadd.f32 %v362_v29, %v360_v27  ;;  %v370_v38 = vmax.f32 %v338_v30, 0.0  ;;  %v1340_v39 = vmul.f32 %v1298_v1, %v240_v25  ;;  %v1343_v40 = vmul.f32 %v1298_v1, %v241_v26 }
  0x17   : > { %v385_v41 = vadd.f32 %v363_v33, %v361_v28  ;;  %v371_v42 = vmax.f32 %v339_v34, 0.0  ;;  %v1346_v43 = vmul.f32 %v1298_v1, %v242_v31  ;;  %v1349_v44 = vmul.f32 %v1298_v1, %v243_v32 }
  0x18   : > { %v432_v45 = vrot.slane %v384_v37, 2  ;;  %v433_v46 = vrot.slane %v384_v37, 4  ;;  %v434_v47 = vrot.slane %v384_v37, 6  ;;  %v1150_v48 = vrot.slane %v384_v37, 9 }
  0x19   : > { %v435_v49 = vrot.slane %v385_v41, 2  ;;  %v436_v50 = vrot.slane %v385_v41, 4  ;;  %v437_v51 = vrot.slane %v385_v41, 6  ;;  %v1154_v52 = vrot.slane %v385_v41, 9 }
  0x1a   : > { %v1151_v53 = vrot.slane %v432_v45, 9  ;;  %v1152_v54 = vrot.slane %v433_v46, 9  ;;  %v1153_v55 = vrot.slane %v434_v47, 9  ;;  %v728_v56 = vadd.f32 %v1150_v48, %v384_v37 }
  0x1b   : > { %v1155_v57 = vrot.slane %v435_v49, 9  ;;  %v1156_v58 = vrot.slane %v436_v50, 9  ;;  %v1157_v59 = vrot.slane %v437_v51, 9  ;;  %v732_v60 = vadd.f32 %v1154_v52, %v385_v41 }
  0x1c   : > { %v729_v61 = vadd.f32 %v1151_v53, %v432_v45  ;;  %v730_v62 = vadd.f32 %v1152_v54, %v433_v46  ;;  %v731_v63 = vadd.f32 %v1153_v55, %v434_v47  ;;  %v857_v0 = vperm.slane %v728_v56, 0  ;;  %v249_v56 = vld [vmem:[%s1304_s26 + $0x48] sm:$0xff] }
  0x1d   : > { %v733_v3 = vadd.f32 %v1155_v57, %v435_v49  ;;  %v734_v4 = vadd.f32 %v1156_v58, %v436_v50  ;;  %v735_v5 = vadd.f32 %v1157_v59, %v437_v51  ;;  %v861_v6 = vperm.slane %v732_v60, 0  ;;  %v248_v51 = vld [vmem:[%s1304_s26 + $0x40] sm:$0xff] }
  0x1e   : > { %v858_v7 = vperm.slane %v729_v61, 0  ;;  %v859_v8 = vperm.slane %v730_v62, 0  ;;  %v860_v9 = vperm.slane %v731_v63, 0  ;;  %v388_v10 = vadd.f32 %v370_v38, %v368_v35  ;;  %v250_v61 = vld [vmem:[%s1304_s26 + $0x50] sm:$0xff] }
  0x1f   : > { %v862_v11 = vperm.slane %v733_v3, 0  ;;  %v863_v12 = vperm.slane %v734_v4, 0  ;;  %v864_v13 = vperm.slane %v735_v5, 0  ;;  %v389_v14 = vadd.f32 %v371_v42, %v369_v36  ;;  %v251_v3 = vld [vmem:[%s1304_s26 + $0x58] sm:$0xff] }
  0x20   : > { %v924_v15 = vsel %vm889_vm0, %v858_v7, %v857_v0  ;;  %v444_v16 = vrot.slane %v388_v10, 2  ;;  %v445_v17 = vrot.slane %v388_v10, 4  ;;  %v446_v18 = vrot.slane %v388_v10, 6 }
  0x21   : > { %v925_v19 = vsel %vm891_vm1, %v859_v8, %v924_v15  ;;  %v447_v20 = vrot.slane %v389_v14, 2  ;;  %v448_v21 = vrot.slane %v389_v14, 4  ;;  %v449_v22 = vrot.slane %v389_v14, 6 }
  0x22   : > { %v926_v23 = vsel %vm893_vm2, %v860_v9, %v925_v19  ;;  %v1166_v24 = vrot.slane %v388_v10, 9  ;;  %v1167_v25 = vrot.slane %v444_v16, 9  ;;  %v1168_v26 = vrot.slane %v445_v17, 9 }
  0x23   : > { %v927_v27 = vsel %vm895_vm3, %v861_v6, %v926_v23  ;;  %v1169_v28 = vrot.slane %v446_v18, 9  ;;  %v1170_v29 = vrot.slane %v389_v14, 9  ;;  %v1171_v30 = vrot.slane %v447_v20, 9 }
  0x24   : > { %v928_v31 = vsel %vm897_vm4, %v862_v11, %v927_v27  ;;  %v1172_v32 = vrot.slane %v448_v21, 9  ;;  %v1173_v33 = vrot.slane %v449_v22, 9  ;;  %v744_v34 = vadd.f32 %v1166_v24, %v388_v10 }
  0x25   : > { %v929_v35 = vsel %vm899_vm5, %v863_v12, %v928_v31  ;;  %v745_v36 = vadd.f32 %v1167_v25, %v444_v16  ;;  %v746_v37 = vadd.f32 %v1168_v26, %v445_v17  ;;  %v747_v38 = vadd.f32 %v1169_v28, %v446_v18 }
  0x26   : > { %v930_v41 = vsel %vm901_vm6, %v864_v13, %v929_v35  ;;  %v748_v42 = vadd.f32 %v1170_v29, %v389_v14  ;;  %v749_v45 = vadd.f32 %v1171_v30, %v447_v20  ;;  %v750_v46 = vadd.f32 %v1172_v32, %v448_v21 }
  0x27   : > { %1186 = vmatmul.msk.f32.vlgmr.msra.gmra.mxu2 %vm952_vm7, %v930_v41  ;;  %v751_v47 = vadd.f32 %v1173_v33, %v449_v22  ;;  %v873_v48 = vperm.slane %v744_v34, 0  ;;  %v874_v49 = vperm.slane %v745_v36, 0  ;;  %v875_v50 = vperm.slane %v746_v37, 0 }
  0x28   : > { %v876_v52 = vperm.slane %v747_v38, 0  ;;  %v877_v53 = vperm.slane %v748_v42, 0  ;;  %v878_v54 = vperm.slane %v749_v45, 0  ;;  %v879_v55 = vperm.slane %v750_v46, 0 }
  0x29   : > { %v880_v57 = vperm.slane %v751_v47, 0  ;;  %v938_v58 = vsel %vm889_vm0, %v874_v49, %v873_v48  ;;  %v312_v59 = vadd.f32 %v1309_v2, %v1340_v39  ;;  %v313_v60 = vadd.f32 %v1309_v2, %v1343_v40  ;;  %v260_v49 = vld [vmem:[%s1304_s26 + $0xa0] sm:$0xff] }
  0x2a   : > { %v939_v62 = vsel %vm891_vm1, %v875_v50, %v938_v58  ;;  %v314_v63 = vadd.f32 %v1309_v2, %v1346_v43  ;;  %v315_v0 = vadd.f32 %v1309_v2, %v1349_v44  ;;  %v284_v4 = vmul.f32 %v1298_v1, %v248_v51  ;;  %v261_v50 = vld [vmem:[%s1304_s26 + $0xa8] sm:$0xff]  ;;  %v262_v51 = vld [vmem:[%s1304_s26 + $0xb0] sm:$0xff] }
  0x2b   : > { %v940_v5 = vsel %vm893_vm2, %v876_v52, %v939_v62  ;;  %v344_v6 = vmax.f32 %v312_v59, 0.0  ;;  %v345_v7 = vmax.f32 %v313_v60, 0.0  ;;  %v285_v39 = vmul.f32 %v1298_v1, %v249_v56  ;;  %v263_v56 = vld [vmem:[%s1304_s26 + $0xb8] sm:$0xff] }
  0x2c   : > { %v941_v40 = vsel %vm895_vm3, %v877_v53, %v940_v5  ;;  %v346_v8 = vmax.f32 %v314_v63, 0.0  ;;  %v347_v9 = vmax.f32 %v315_v0, 0.0  ;;  %v286_v10 = vmul.f32 %v1298_v1, %v250_v61 }
  0x2d   : > { %v942_v43 = vsel %vm897_vm4, %v878_v54, %v941_v40  ;;  %v287_v11 = vmul.f32 %v1298_v1, %v251_v3  ;;  %v320_v44 = vadd.f32 %v1309_v2, %v284_v4  ;;  %v321_v12 = vadd.f32 %v1309_v2, %v285_v39 }
  0x2e   : > { %v943_v13 = vsel %vm899_vm5, %v879_v55, %v942_v43  ;;  %v376_v14 = vadd.f32 %v346_v8, %v344_v6  ;;  %v377_v15 = vadd.f32 %v347_v9, %v345_v7  ;;  %v322_v16 = vadd.f32 %v1309_v2, %v286_v10 }
  0x2f   : > { %v944_v17 = vsel %vm901_vm6, %v880_v57, %v943_v13  ;;  %v323_v18 = vadd.f32 %v1309_v2, %v287_v11  ;;  %v352_v19 = vmax.f32 %v320_v44, 0.0  ;;  %v353_v20 = vmax.f32 %v321_v12, 0.0 }
  0x30   : > { %1188 = vmatmul.msk.f32.vlgmr.msra.gmra.mxu3 %vm952_vm7, %v944_v17  ;;  %v408_v21 = vrot.slane %v376_v14, 2  ;;  %v409_v22 = vrot.slane %v376_v14, 4  ;;  %v410_v23 = vrot.slane %v376_v14, 6  ;;  %v411_v24 = vrot.slane %v377_v15, 2 }
  0x31   : > { %v412_v25 = vrot.slane %v377_v15, 4  ;;  %v413_v26 = vrot.slane %v377_v15, 6  ;;  %v1118_v27 = vrot.slane %v376_v14, 9  ;;  %v1122_v28 = vrot.slane %v377_v15, 9 }
  0x32   : > { %v1119_v29 = vrot.slane %v408_v21, 9  ;;  %v1120_v30 = vrot.slane %v409_v22, 9  ;;  %v1121_v31 = vrot.slane %v410_v23, 9  ;;  %v1123_v32 = vrot.slane %v411_v24, 9 }
  0x33   : > { %v1124_v33 = vrot.slane %v412_v25, 9  ;;  %v1125_v34 = vrot.slane %v413_v26, 9  ;;  %v696_v35 = vadd.f32 %v1118_v27, %v376_v14  ;;  %v700_v36 = vadd.f32 %v1122_v28, %v377_v15 }
  0x34   : > { %v697_v37 = vadd.f32 %v1119_v29, %v408_v21  ;;  %v698_v38 = vadd.f32 %v1120_v30, %v409_v22  ;;  %v699_v41 = vadd.f32 %v1121_v31, %v410_v23  ;;  %v701_v42 = vadd.f32 %v1123_v32, %v411_v24 }
  0x35   : > { %v702_v45 = vadd.f32 %v1124_v33, %v412_v25  ;;  %v703_v46 = vadd.f32 %v1125_v34, %v413_v26  ;;  %v825_v47 = vperm.slane %v696_v35, 0  ;;  %v829_v48 = vperm.slane %v700_v36, 0 }
  0x36   : > { %v826_v52 = vperm.slane %v697_v37, 0  ;;  %v827_v53 = vperm.slane %v698_v38, 0  ;;  %v828_v54 = vperm.slane %v699_v41, 0  ;;  %v830_v55 = vperm.slane %v701_v42, 0  ;;  %v268_v41 = vld [vmem:[%s1304_s26 + $0xe0] sm:$0xff]  ;;  %v269_v42 = vld [vmem:[%s1304_s26 + $0xe8] sm:$0xff] }
  0x37   : > { %v831_v57 = vperm.slane %v702_v45, 0  ;;  %v832_v58 = vperm.slane %v703_v46, 0  ;;  %v354_v59 = vmax.f32 %v322_v16, 0.0  ;;  %v355_v60 = vmax.f32 %v323_v18, 0.0 }
  0x38   : > { %v890_v61 = vsel %vm889_vm0, %v826_v52, %v825_v47  ;;  %v296_v62 = vmul.f32 %v1298_v1, %v260_v49  ;;  %v297_v63 = vmul.f32 %v1298_v1, %v261_v50  ;;  %v298_v0 = vmul.f32 %v1298_v1, %v262_v51  ;;  %v270_v49 = vld [vmem:[%s1304_s26 + $0xf0] sm:$0xff]  ;;  %v271_v50 = vld [vmem:[%s1304_s26 + $0xf8] sm:$0xff] }
  0x39   : > { %v892_v3 = vsel %vm891_vm1, %v827_v53, %v890_v61  ;;  %v380_v4 = vadd.f32 %v354_v59, %v352_v19  ;;  %v381_v5 = vadd.f32 %v355_v60, %v353_v20  ;;  %v299_v6 = vmul.f32 %v1298_v1, %v263_v56 }
  0x3a   : > { %v894_v7 = vsel %vm893_vm2, %v828_v54, %v892_v3  ;;  %v332_v39 = vadd.f32 %v1309_v2, %v296_v62  ;;  %v333_v40 = vadd.f32 %v1309_v2, %v297_v63  ;;  %v334_v8 = vadd.f32 %v1309_v2, %v298_v0 }
  0x3b   : > { %v896_v9 = vsel %vm895_vm3, %v829_v48, %v894_v7  ;;  %v420_v10 = vrot.slane %v380_v4, 2  ;;  %v421_v43 = vrot.slane %v380_v4, 4  ;;  %v422_v11 = vrot.slane %v380_v4, 6 }
  0x3c   : > { %v898_v44 = vsel %vm897_vm4, %v830_v55, %v896_v9  ;;  %v423_v12 = vrot.slane %v381_v5, 2  ;;  %v424_v13 = vrot.slane %v381_v5, 4  ;;  %v425_v14 = vrot.slane %v381_v5, 6 }
  0x3d   : > { %v900_v15 = vsel %vm899_vm5, %v831_v57, %v898_v44  ;;  %v1134_v16 = vrot.slane %v380_v4, 9  ;;  %v1135_v17 = vrot.slane %v420_v10, 9  ;;  %v1136_v18 = vrot.slane %v421_v43, 9 }
  0x3e   : > { %v902_v19 = vsel %vm901_vm6, %v832_v58, %v900_v15  ;;  %v1137_v20 = vrot.slane %v422_v11, 9  ;;  %v1138_v21 = vrot.slane %v381_v5, 9  ;;  %v1139_v22 = vrot.slane %v423_v12, 9 }
  0x3f   : > { %1182 = vmatmul.msk.f32.vlgmr.msra.gmra.mxu0 %vm952_vm7, %v902_v19  ;;  %v1140_v23 = vrot.slane %v424_v13, 9  ;;  %v1141_v24 = vrot.slane %v425_v14, 9  ;;  %v712_v25 = vadd.f32 %v1134_v16, %v380_v4  ;;  %v713_v26 = vadd.f32 %v1135_v17, %v420_v10 }
  0x40   : > { %v714_v27 = vadd.f32 %v1136_v18, %v421_v43  ;;  %v715_v28 = vadd.f32 %v1137_v20, %v422_v11  ;;  %v716_v29 = vadd.f32 %v1138_v21, %v381_v5  ;;  %v717_v30 = vadd.f32 %v1139_v22, %v423_v12 }
  0x41   : > { %v718_v31 = vadd.f32 %v1140_v23, %v424_v13  ;;  %v719_v32 = vadd.f32 %v1141_v24, %v425_v14  ;;  %v841_v33 = vperm.slane %v712_v25, 0  ;;  %v842_v34 = vperm.slane %v713_v26, 0 }
  0x42   : > { %v843_v35 = vperm.slane %v714_v27, 0  ;;  %v844_v36 = vperm.slane %v715_v28, 0  ;;  %v845_v37 = vperm.slane %v716_v29, 0  ;;  %v846_v38 = vperm.slane %v717_v30, 0  ;;  %v244_v29 = vld [vmem:[%s1304_s26 + $0x20] sm:$0xff]  ;;  %v245_v30 = vld [vmem:[%s1304_s26 + $0x28] sm:$0xff] }
  0x43   : > { %v847_v45 = vperm.slane %v718_v31, 0  ;;  %v848_v46 = vperm.slane %v719_v32, 0  ;;  %v910_v47 = vsel %vm889_vm0, %v842_v34, %v841_v33  ;;  %v335_v48 = vadd.f32 %v1309_v2, %v299_v6 }
  0x44   : > { %v911_v51 = vsel %vm891_vm1, %v843_v35, %v910_v47  ;;  %v364_v52 = vmax.f32 %v332_v39, 0.0  ;;  %v365_v53 = vmax.f32 %v333_v40, 0.0  ;;  %v366_v54 = vmax.f32 %v334_v8, 0.0  ;;  %v246_v35 = vld [vmem:[%s1304_s26 + $0x30] sm:$0xff] }
  0x45   : > { %v912_v55 = vsel %vm893_vm2, %v844_v36, %v911_v51  ;;  %v367_v56 = vmax.f32 %v335_v48, 0.0  ;;  %v304_v57 = vmul.f32 %v1298_v1, %v268_v41  ;;  %v305_v58 = vmul.f32 %v1298_v1, %v269_v42  ;;  %v247_v42 = vld [vmem:[%s1304_s26 + $0x38] sm:$0xff] }
  0x46   : > { %v913_v59 = vsel %vm895_vm3, %v845_v37, %v912_v55  ;;  %v386_v60 = vadd.f32 %v366_v54, %v364_v52  ;;  %v306_v61 = vmul.f32 %v1298_v1, %v270_v49  ;;  %v307_v62 = vmul.f32 %v1298_v1, %v271_v50 }
  0x47   : > { %v914_v63 = vsel %vm897_vm4, %v846_v38, %v913_v59  ;;  %v387_v0 = vadd.f32 %v367_v56, %v365_v53  ;;  %v340_v3 = vadd.f32 %v1309_v2, %v304_v57  ;;  %v341_v4 = vadd.f32 %v1309_v2, %v305_v58 }
  0x48   : > { %v915_v5 = vsel %vm899_vm5, %v847_v45, %v914_v63  ;;  %v438_v6 = vrot.slane %v386_v60, 2  ;;  %v439_v7 = vrot.slane %v386_v60, 4  ;;  %v440_v39 = vrot.slane %v386_v60, 6 }
  0x49   : > { %v916_v40 = vsel %vm901_vm6, %v848_v46, %v915_v5  ;;  %v441_v8 = vrot.slane %v387_v0, 2  ;;  %v442_v9 = vrot.slane %v387_v0, 4  ;;  %v443_v10 = vrot.slane %v387_v0, 6 }
  0x4a   : > { %1184 = vmatmul.msk.f32.vlgmr.msra.gmra.mxu1 %vm952_vm7, %v916_v40  ;;  %v1158_v43 = vrot.slane %v386_v60, 9  ;;  %v1159_v11 = vrot.slane %v438_v6, 9  ;;  %v1160_v44 = vrot.slane %v439_v7, 9  ;;  %v1161_v12 = vrot.slane %v440_v39, 9 }
  0x4b   : > { %v1162_v13 = vrot.slane %v387_v0, 9  ;;  %v1163_v14 = vrot.slane %v441_v8, 9  ;;  %v1164_v15 = vrot.slane %v442_v9, 9  ;;  %v1165_v16 = vrot.slane %v443_v10, 9 }
  0x4c   : > { %v736_v17 = vadd.f32 %v1158_v43, %v386_v60  ;;  %v737_v18 = vadd.f32 %v1159_v11, %v438_v6  ;;  %v738_v19 = vadd.f32 %v1160_v44, %v439_v7  ;;  %v739_v20 = vadd.f32 %v1161_v12, %v440_v39 }
  0x4d   : > { %v740_v21 = vadd.f32 %v1162_v13, %v387_v0  ;;  %v741_v22 = vadd.f32 %v1163_v14, %v441_v8  ;;  %v742_v23 = vadd.f32 %v1164_v15, %v442_v9  ;;  %v743_v24 = vadd.f32 %v1165_v16, %v443_v10 }
  0x4e   : > { %v865_v25 = vperm.slane %v736_v17, 0  ;;  %v866_v26 = vperm.slane %v737_v18, 0  ;;  %v867_v27 = vperm.slane %v738_v19, 0  ;;  %v868_v28 = vperm.slane %v739_v20, 0 }
  0x4f   : > { %v869_v31 = vperm.slane %v740_v21, 0  ;;  %v870_v32 = vperm.slane %v741_v22, 0  ;;  %v871_v33 = vperm.slane %v742_v23, 0  ;;  %v872_v34 = vperm.slane %v743_v24, 0  ;;  %v252_v23 = vld [vmem:[%s1304_s26 + $0x60] sm:$0xff]  ;;  %v253_v24 = vld [vmem:[%s1304_s26 + $0x68] sm:$0xff] }
  0x50   : > { %v931_v36 = vsel %vm889_vm0, %v866_v26, %v865_v25  ;;  %v342_v37 = vadd.f32 %v1309_v2, %v306_v61  ;;  %v343_v38 = vadd.f32 %v1309_v2, %v307_v62  ;;  %v372_v41 = vmax.f32 %v340_v3, 0.0 }
  0x51   : > { %v932_v45 = vsel %vm891_vm1, %v867_v27, %v931_v36  ;;  %v373_v46 = vmax.f32 %v341_v4, 0.0  ;;  %v280_v47 = vmul.f32 %v1298_v1, %v244_v29  ;;  %v281_v48 = vmul.f32 %v1298_v1, %v245_v30  ;;  %v254_v29 = vld [vmem:[%s1304_s26 + $0x70] sm:$0xff]  ;;  %v255_v30 = vld [vmem:[%s1304_s26 + $0x78] sm:$0xff] }
  0x52   : > { %v933_v49 = vsel %vm893_vm2, %v868_v28, %v932_v45  ;;  %v374_v50 = vmax.f32 %v342_v37, 0.0  ;;  %v375_v51 = vmax.f32 %v343_v38, 0.0  ;;  %v282_v52 = vmul.f32 %v1298_v1, %v246_v35 }
  0x53   : > { %v934_v53 = vsel %vm895_vm3, %v869_v31, %v933_v49  ;;  %v283_v54 = vmul.f32 %v1298_v1, %v247_v42  ;;  %v316_v55 = vadd.f32 %v1309_v2, %v280_v47  ;;  %v317_v56 = vadd.f32 %v1309_v2, %v281_v48 }
  0x54   : > { %v935_v57 = vsel %vm897_vm4, %v870_v32, %v934_v53  ;;  %v390_v58 = vadd.f32 %v374_v50, %v372_v41  ;;  %v391_v59 = vadd.f32 %v375_v51, %v373_v46  ;;  %v318_v60 = vadd.f32 %v1309_v2, %v282_v52 }
  0x55   : > { %v936_v61 = vsel %vm899_vm5, %v871_v33, %v935_v57  ;;  %v319_v62 = vadd.f32 %v1309_v2, %v283_v54  ;;  %v348_v63 = vmax.f32 %v316_v55, 0.0  ;;  %v349_v0 = vmax.f32 %v317_v56, 0.0 }
  0x56   : > { %v937_v3 = vsel %vm901_vm6, %v872_v34, %v936_v61  ;;  %v450_v4 = vrot.slane %v390_v58, 2  ;;  %v451_v5 = vrot.slane %v390_v58, 4  ;;  %v452_v6 = vrot.slane %v390_v58, 6 }
  0x57   : > { %1187 = vmatmul.msk.f32.gmra.mxu2 %vm952_vm7, %v937_v3  ;;  %v453_v7 = vrot.slane %v391_v59, 2  ;;  %v454_v39 = vrot.slane %v391_v59, 4  ;;  %v455_v40 = vrot.slane %v391_v59, 6  ;;  %v1174_v8 = vrot.slane %v390_v58, 9 }
  0x58   : > { %v1175_v9 = vrot.slane %v450_v4, 9  ;;  %v1176_v10 = vrot.slane %v451_v5, 9  ;;  %v1177_v43 = vrot.slane %v452_v6, 9  ;;  %v1178_v11 = vrot.slane %v391_v59, 9 }
  0x59   : > { %v1179_v44 = vrot.slane %v453_v7, 9  ;;  %v1180_v12 = vrot.slane %v454_v39, 9  ;;  %v1181_v13 = vrot.slane %v455_v40, 9  ;;  %v752_v14 = vadd.f32 %v1174_v8, %v390_v58 }
  0x5a   : > { %v753_v15 = vadd.f32 %v1175_v9, %v450_v4  ;;  %v754_v16 = vadd.f32 %v1176_v10, %v451_v5  ;;  %v755_v17 = vadd.f32 %v1177_v43, %v452_v6  ;;  %v756_v18 = vadd.f32 %v1178_v11, %v391_v59 }
  0x5b   : > { %v757_v19 = vadd.f32 %v1179_v44, %v453_v7  ;;  %v758_v20 = vadd.f32 %v1180_v12, %v454_v39  ;;  %v759_v21 = vadd.f32 %v1181_v13, %v455_v40  ;;  %v881_v22 = vperm.slane %v752_v14, 0 }
  0x5c   : > { %v882_v25 = vperm.slane %v753_v15, 0  ;;  %v883_v26 = vperm.slane %v754_v16, 0  ;;  %v884_v27 = vperm.slane %v755_v17, 0  ;;  %v885_v28 = vperm.slane %v756_v18, 0 }
  0x5d   : > { %v886_v31 = vperm.slane %v757_v19, 0  ;;  %v887_v32 = vperm.slane %v758_v20, 0  ;;  %v888_v33 = vperm.slane %v759_v21, 0  ;;  %v350_v34 = vmax.f32 %v318_v60, 0.0 }
  0x5e   : > { %v945_v35 = vsel %vm889_vm0, %v882_v25, %v881_v22  ;;  %v351_v36 = vmax.f32 %v319_v62, 0.0  ;;  %v288_v37 = vmul.f32 %v1298_v1, %v252_v23  ;;  %v289_v38 = vmul.f32 %v1298_v1, %v253_v24 }
  0x5f   : > { %v946_v41 = vsel %vm891_vm1, %v883_v26, %v945_v35  ;;  %v378_v42 = vadd.f32 %v350_v34, %v348_v63  ;;  %v290_v45 = vmul.f32 %v1298_v1, %v254_v29  ;;  %v291_v46 = vmul.f32 %v1298_v1, %v255_v30 }
  0x60   : > { %v947_v47 = vsel %vm893_vm2, %v884_v27, %v946_v41  ;;  %v379_v48 = vadd.f32 %v351_v36, %v349_v0  ;;  %v324_v49 = vadd.f32 %v1309_v2, %v288_v37  ;;  %v325_v50 = vadd.f32 %v1309_v2, %v289_v38 }
  0x61   : > { %v948_v51 = vsel %vm895_vm3, %v885_v28, %v947_v47  ;;  %v414_v52 = vrot.slane %v378_v42, 2  ;;  %v415_v53 = vrot.slane %v378_v42, 4  ;;  %v416_v54 = vrot.slane %v378_v42, 6 }
  0x62   : > { %v949_v55 = vsel %vm897_vm4, %v886_v31, %v948_v51  ;;  %v417_v56 = vrot.slane %v379_v48, 2  ;;  %v418_v57 = vrot.slane %v379_v48, 4  ;;  %v419_v58 = vrot.slane %v379_v48, 6 }
  0x63   : > { %v950_v59 = vsel %vm899_vm5, %v887_v32, %v949_v55  ;;  %v1126_v1 = vrot.slane %v378_v42, 9  ;;  %v1127_v60 = vrot.slane %v414_v52, 9  ;;  %v1128_v61 = vrot.slane %v415_v53, 9 }
  0x64   : > { %v951_v62 = vsel %vm901_vm6, %v888_v33, %v950_v59  ;;  %v1129_v63 = vrot.slane %v416_v54, 9  ;;  %v1130_v0 = vrot.slane %v379_v48, 9  ;;  %v1131_v3 = vrot.slane %v417_v56, 9 }
  0x65   : > { %1189 = vmatmul.msk.f32.gmra.mxu3 %vm952_vm7, %v951_v62  ;;  %v1132_v4 = vrot.slane %v418_v57, 9  ;;  %v1133_v5 = vrot.slane %v419_v58, 9  ;;  %v704_v6 = vadd.f32 %v1126_v1, %v378_v42  ;;  %v705_v7 = vadd.f32 %v1127_v60, %v414_v52 }
  0x66   : > { %v706_v39 = vadd.f32 %v1128_v61, %v415_v53  ;;  %v707_v40 = vadd.f32 %v1129_v63, %v416_v54  ;;  %v708_v8 = vadd.f32 %v1130_v0, %v379_v48  ;;  %v709_v9 = vadd.f32 %v1131_v3, %v417_v56 }
  0x67   : > { %v710_v10 = vadd.f32 %v1132_v4, %v418_v57  ;;  %v711_v43 = vadd.f32 %v1133_v5, %v419_v58  ;;  %v833_v11 = vperm.slane %v704_v6, 0  ;;  %v834_v44 = vperm.slane %v705_v7, 0 }
  0x68   : > { %v835_v12 = vperm.slane %v706_v39, 0  ;;  %v836_v13 = vperm.slane %v707_v40, 0  ;;  %v837_v14 = vperm.slane %v708_v8, 0  ;;  %v838_v15 = vperm.slane %v709_v9, 0 }
  0x69   : > { %v839_v16 = vperm.slane %v710_v10, 0  ;;  %v903_v17 = vsel %vm889_vm0, %v834_v44, %v833_v11  ;;  %v326_v18 = vadd.f32 %v1309_v2, %v290_v45  ;;  %v327_v20 = vadd.f32 %v1309_v2, %v291_v46 }
  0x6a   : > { %v904_v19 = vsel %vm891_vm1, %v835_v12, %v903_v17  ;;  %v356_v21 = vmax.f32 %v324_v49, 0.0  ;;  %v357_v22 = vmax.f32 %v325_v50, 0.0  ;;  %v840_v23 = vperm.slane %v711_v43, 0 }
  0x6b   : > { %v905_v24 = vsel %vm893_vm2, %v836_v13, %v904_v19  ;;  %v358_v25 = vmax.f32 %v326_v18, 0.0  ;;  %v359_v27 = vmax.f32 %v327_v20, 0.0 }
  0x6c   : > { %v906_v26 = vsel %vm895_vm3, %v837_v14, %v905_v24 }
  0x6d   : > { %v907_v28 = vsel %vm897_vm4, %v838_v15, %v906_v26  ;;  %v382_v29 = vadd.f32 %v358_v25, %v356_v21  ;;  %v383_v31 = vadd.f32 %v359_v27, %v357_v22 }
  0x6e   : > { %v908_v30 = vsel %vm899_vm5, %v839_v16, %v907_v28 }
  0x6f   : > { %v909_v32 = vsel %vm901_vm6, %v840_v23, %v908_v30  ;;  %v426_v33 = vrot.slane %v382_v29, 2  ;;  %v427_v34 = vrot.slane %v382_v29, 4  ;;  %v428_v2 = vrot.slane %v382_v29, 6 }
  0x70   : > { %1183 = vmatmul.msk.f32.gmra.mxu0 %vm952_vm7, %v909_v32  ;;  %v429_v35 = vrot.slane %v383_v31, 2  ;;  %v430_v36 = vrot.slane %v383_v31, 4  ;;  %v431_v37 = vrot.slane %v383_v31, 6  ;;  %v1142_v38 = vrot.slane %v382_v29, 9 }
  0x71   : > { %v1143_v41 = vrot.slane %v426_v33, 9  ;;  %v1144_v42 = vrot.slane %v427_v34, 9  ;;  %v1145_v45 = vrot.slane %v428_v2, 9  ;;  %v1146_v46 = vrot.slane %v383_v31, 9 }
  0x72   : > { %v1147_v47 = vrot.slane %v429_v35, 9  ;;  %v1148_v48 = vrot.slane %v430_v36, 9  ;;  %v1149_v49 = vrot.slane %v431_v37, 9  ;;  %v720_v50 = vadd.f32 %v1142_v38, %v382_v29 }
  0x73   : > { %v721_v51 = vadd.f32 %v1143_v41, %v426_v33  ;;  %v722_v52 = vadd.f32 %v1144_v42, %v427_v34  ;;  %v723_v53 = vadd.f32 %v1145_v45, %v428_v2  ;;  %v724_v54 = vadd.f32 %v1146_v46, %v383_v31 }
  0x74   : > { %v725_v55 = vadd.f32 %v1147_v47, %v429_v35  ;;  %v726_v56 = vadd.f32 %v1148_v48, %v430_v36  ;;  %v849_v57 = vperm.slane %v720_v50, 0  ;;  %v727_v58 = vadd.f32 %v1149_v49, %v431_v37 }
  0x75   : > { %v850_v59 = vperm.slane %v721_v51, 0  ;;  %v851_v1 = vperm.slane %v722_v52, 0  ;;  %v852_v60 = vperm.slane %v723_v53, 0  ;;  %v853_v61 = vperm.slane %v724_v54, 0 }
  0x76   : > { %v854_v62 = vperm.slane %v725_v55, 0  ;;  %v855_v0 = vperm.slane %v726_v56, 0  ;;  %v856_v4 = vperm.slane %v727_v58, 0 }
  0x77   : > { %v917_v63 = vsel %vm889_vm0, %v850_v59, %v849_v57 }
  0x78   : > { %v918_v3 = vsel %vm891_vm1, %v851_v1, %v917_v63 }
  0x79   : > { %v919_v5 = vsel %vm893_vm2, %v852_v60, %v918_v3 }
  0x7a   : > { %v920_v6 = vsel %vm895_vm3, %v853_v61, %v919_v5 }
  0x7b   : > { %v921_v7 = vsel %vm897_vm4, %v854_v62, %v920_v6 }
  0x7c   : > { %v922_v39 = vsel %vm899_vm5, %v855_v0, %v921_v7 }
  0x7d   : > { %v923_v40 = vsel %vm901_vm6, %v856_v4, %v922_v39 }
  0x7e   : > { %1185 = vmatmul.msk.f32.gmra.mxu1 %vm952_vm7, %v923_v40 }
  0xaa   : > { %v998_v8 = vpop.f32.mrf.mxu2 }
  0xab   : > { %1015 = vst.msk [vmem:[%s238_s6 + $0x20] sm:$0xff] %vm1010_vm8, %v998_v8 }
  0xb3   : > { %v1004_v9 = vpop.f32.mrf.mxu3 }
  0xb4   : > { %1017 = vst.msk [vmem:[%s238_s6 + $0x30] sm:$0xff] %vm1010_vm8, %v1004_v9 }
  0xbc   : > { %v986_v10 = vpop.f32.mrf.mxu0 }
  0xbd   : > { %1011 = vst.msk [vmem:[%s238_s6] sm:$0xff] %vm1010_vm8, %v986_v10 }
  0xc7   : > { %v992_v43 = vpop.f32.mrf.mxu1 }
  0xc8   : > { %1013 = vst.msk [vmem:[%s238_s6 + $0x10] sm:$0xff] %vm1010_vm8, %v992_v43 }
  0xda   : > { %v1001_v11 = vpop.f32.mrf.mxu2 }
  0xdb   : > { %1016 = vst.msk [vmem:[%s238_s6 + $0x28] sm:$0xff] %vm1010_vm8, %v1001_v11 }
  0xe8   : > { %v1007_v44 = vpop.f32.mrf.mxu3 }
  0xe9   : > { %1018 = vst.msk [vmem:[%s238_s6 + $0x38] sm:$0xff] %vm1010_vm8, %v1007_v44 }
  0xed   : > { %v989_v12 = vpop.f32.mrf.mxu0 }
  0xee   : > { %1012 = vst.msk [vmem:[%s238_s6 + $0x8] sm:$0xff] %vm1010_vm8, %v989_v12 }
  0xfb   : > { %v995_v13 = vpop.f32.mrf.mxu1 }
  0xfc   : > { %1014 = vst.msk [vmem:[%s238_s6 + $0x18] sm:$0xff] %vm1010_vm8, %v995_v13 }
  0xfd PF: > { %s14_s17 = sadd.s32 1, %s1245_s17   ;;  %s1509_s15 = smov %s1241_s16 }
  0xfe   : > { %p11_p5 = scmp.ge.s32.totalorder %s14_s17, 4   ;;  %s1510_s16 = smov %s1512_s18 }
 0x100   :  { %13 = sbr.rel (!%p11_p5) target bundleno = 2 (0x2), region = 66 }

</bundles_post_ra>
